<compile_context>
chip_gen: v7x
topology: tpu7x:2x2x1
jax: 0.10.0
libtpu: 0.0.40
codegen_flags: <defaults>
</compile_context>

<pallas_src>
import math

import jax
import jax.numpy as jnp
from jax.experimental import pallas as pl
from jax.experimental.pallas import tpu as pltpu

EPS = 1e-07
LANE = 128
MAX_BT = 4096                       # hard row-tile cap (2 MiB f32 block)
VMEM_BUDGET = 14 << 20              # conservative: fits v5e's 16 MiB scoped default
_LOG_EPS = math.log(EPS)
_LOG_1MEPS = math.log1p(-EPS)


def _num_tensorcores():
    """2 when both TensorCores sit behind one Pallas grid (megacore / v7x), else 1."""
    try:
        kind = jax.devices()[0].device_kind.lower()
    except Exception:
        return 1
    if any(tag in kind for tag in ("v7", "7x", "v4", "v5p")):
        return 2
    return 1


def _elementwise_loss_sum(x, y, pw_elem, gamma, ls2, ignore):
    """Reference-math loss sum for tiny flat slices (ragged tails / sub-128 inputs)."""
    x = x.astype(jnp.float32)
    y = y.astype(jnp.float32)
    valid = y != ignore
    sp_neg = jnp.maximum(-x, 0.0) + jnp.log1p(jnp.exp(-jnp.abs(x)))
    sp_pos = sp_neg + x
    if gamma == 0.0:
        weight = jnp.float32(1.0)
    else:
        p = jnp.clip(jnp.exp(-sp_neg), EPS, 1.0 - EPS)
        q = 1.0 - p
        weight = q ** gamma * y + p ** gamma * (1.0 - y)
    y_s = y if ls2 == 0.0 else y * (1.0 - ls2) + 0.5 * ls2
    if pw_elem is None:
        bce = sp_pos - y_s * x
    else:
        bce = sp_pos + y_s * ((pw_elem.astype(jnp.float32) - 1.0) * sp_neg - x)
    return jnp.sum(jnp.where(valid, bce * weight, 0.0))


def _make_kernel(*, has_pw, pw_rows, gamma, ls2, ignore, bt, bpc, n_rows, mask_rows):
    g = float(gamma)
    int_gamma = g.is_integer() and 1.0 <= g <= 8.0

    def kernel(*refs):
        if has_pw:
            x_ref, y_ref, pw_ref, out_ref, acc_ref = refs
        else:
            x_ref, y_ref, out_ref, acc_ref = refs

        i = pl.program_id(1)

        @pl.when(i == 0)
        def _init():
            acc_ref[...] = jnp.zeros_like(acc_ref)

        x = x_ref[...].astype(jnp.float32)
        y = y_ref[...].astype(jnp.float32)

        # softplus(-x) / softplus(x); sigmoid(x) == exp(-softplus(-x))
        sp_neg = jnp.maximum(-x, 0.0) + jnp.log1p(jnp.exp(-jnp.abs(x)))
        sp_pos = sp_neg + x

        # Focal weight from the ORIGINAL (un-smoothed) label, clamped prob.
        if g == 0.0:
            weight = None                        # (1-p)^0*y + p^0*(1-y) == 1
        elif int_gamma:
            n = int(g)
            p = jnp.clip(jnp.exp(-sp_neg), EPS, 1.0 - EPS)
            q = 1.0 - p
            pg, qg = p, q
            for _ in range(n - 1):               # integer powers: multiplies only
                pg = pg * p
                qg = qg * q
            weight = pg + (qg - pg) * y
        else:
            log_p = jnp.clip(-sp_neg, _LOG_EPS, _LOG_1MEPS)
            log_q = jnp.clip(-sp_pos, _LOG_EPS, _LOG_1MEPS)
            pg = jnp.exp(g * log_p)
            qg = jnp.exp(g * log_q)
            weight = pg + (qg - pg) * y

        # label smoothing (module stores 2 * label_smoothing internally)
        y_s = y if ls2 == 0.0 else y * (1.0 - ls2) + 0.5 * ls2

        # BCEWithLogitsLoss(reduction='none', pos_weight=pw) rewritten as
        #   sp_pos + y_s*((pw-1)*sp_neg - x)   ==  sp_pos - y_s*x  when pw == 1
        if has_pw:
            pwm1 = pw_ref[...].astype(jnp.float32)     # (pw_rows, LANE), already pw-1
            if pw_rows != bt:                          # periodic table -> full block
                pwm1 = jnp.tile(pwm1, (bt // pw_rows, 1))
            bce = sp_pos + y_s * (pwm1 * sp_neg - x)
        else:
            bce = sp_pos - y_s * x

        contrib = bce if weight is None else bce * weight

        # ONE select handles ignore_index and (if needed) ragged / core-overshoot
        # rows.  It must stay a select, never a mask multiply, so Inf/NaN from
        # out-of-bounds garbage rows can never reach the accumulator.
        valid = y != ignore
        if mask_rows:
            c = pl.program_id(0)
            row0 = (c * bpc + i) * bt
            rows = row0 + jax.lax.broadcasted_iota(jnp.int32, (bt, 1), 0)
            valid = valid & (rows < n_rows)
        contrib = jnp.where(valid, contrib, 0.0)

        acc_ref[...] += jnp.sum(contrib, axis=0, keepdims=True)

        @pl.when(i == pl.num_programs(1) - 1)
        def _finalize():
            out_ref[...] = jnp.full(out_ref.shape, jnp.sum(acc_ref[...]), jnp.float32)

    return kernel


def binary_focal_loss(outputs, label, *, pos_weight=None, ignore_index=-1,
                      gamma=0.0, label_smoothing=0.0, row_tile=4096, num_cores=None):
    """Pallas implementation of BinaryFocalLoss.forward (returns the scalar loss)."""
    outputs = jnp.asarray(outputs)
    label = jnp.asarray(label)

    if outputs.shape != label.shape and (1, *label.shape) == outputs.shape:
        label = label[None]
    assert outputs.shape == label.shape, f"{outputs.shape} vs {label.shape}"
    assert outputs.ndim in (2, 3), "expected (N, K) or (N, K, T) inputs"

    sequence = outputs.ndim == 3
    if sequence:
        N, K, T = outputs.shape
    else:
        N, K = outputs.shape
        T = 1

    ign = float(ignore_index)
    ls2 = 2.0 * float(label_smoothing)
    g = float(gamma)

    # mirrors `label.float()`; integer/bool labels -> bf16 (0/1/ignore exact),
    # halving the label stream's HBM bytes on HBM-bound chips.
    if not jnp.issubdtype(label.dtype, jnp.floating):
        label = label.astype(jnp.bfloat16 if abs(ignore_index) <= 256 else jnp.float32)

    has_pw = pos_weight is not None
    pw = jnp.asarray(pos_weight, jnp.float32).reshape(K) if has_pw else None

    # Native row-major flatten (NO transpose, even for sequences: the loss is a
    # plain sum over all elements divided by N, so element order is irrelevant).
    # class of flat element e:  2-D: e % K        3-D: (e // T) % K
    period = K * T if sequence else K

    def _cls(idx):
        return (idx // T) % K if sequence else idx % K

    x_flat = outputs.reshape(-1)
    y_flat = label.reshape(-1)
    E = x_flat.shape[0]
    R = E // LANE
    E_main = R * LANE
    tail = E - E_main

    def _pw_for(idx):
        return pw[_cls(idx)] if has_pw else None

    if R == 0:                                   # sub-128-element inputs: pure JAX
        total = _elementwise_loss_sum(x_flat, y_flat, _pw_for(jnp.arange(E)),
                                      g, ls2, ign)
        return total / jnp.float32(N)

    # <128-element ragged tail handled in plain JAX and added to the kernel sum.
    # TODO(synk): a fully zero-copy main view for ragged flat sizes would need a
    # manual-DMA (memory_space=pl.ANY) path; the prefix slice below is still far
    # cheaper than the old pad+concatenate of the whole input.
    tail_sum = jnp.float32(0.0)
    if tail:
        tail_sum = _elementwise_loss_sum(x_flat[E_main:], y_flat[E_main:],
                                         _pw_for(jnp.arange(E_main, E)), g, ls2, ign)
        x_flat = x_flat[:E_main]
        y_flat = y_flat[:E_main]
    x_m = x_flat.reshape(R, LANE)                # zero-copy reshape when tail == 0
    y_m = y_flat.reshape(R, LANE)

    # ---- pos_weight -> small periodic per-lane table, or (rare) full stream ----
    pw_mode = None
    unit = 8
    if has_pw:
        P = period // math.gcd(period, LANE)     # row period of the class pattern
        P8 = (P * 8) // math.gcd(P, 8)           # lcm(P, 8): sublane-aligned period
        if P8 <= MAX_BT:
            pw_mode = "pattern"
            unit = P8
        else:
            pw_mode = "stream"                   # awkward K*T period: per-element pw

    # ---- row-block size: >=1-2 MiB per input stream, bounded so
    #      (2 pipeline buffers per stream + ~5 block-sized f32 intermediates)
    #      fit the default scoped VMEM of every generation (16 MiB v5e,
    #      32 MiB v6e, 32 MiB default / 64 MiB physical per-TC on v7x). ----
    x_b = jnp.dtype(outputs.dtype).itemsize
    y_b = jnp.dtype(label.dtype).itemsize
    stream_b = 8 if pw_mode == "stream" else 0
    per_row_bytes = LANE * (2 * x_b + 2 * y_b + stream_b + 5 * 4)
    cap = min(MAX_BT, max(1, int(row_tile)), VMEM_BUDGET // per_row_bytes)
    cap = max(unit, (cap // unit) * unit)
    bt = R if R <= cap else cap
    nb = -(-R // bt)                             # total row blocks

    # pos_weight operand (already pw - 1, folded into the bce rewrite)
    pw_in = None
    pw_rows = bt
    if pw_mode == "pattern":
        pw_rows = P8 if bt % P8 == 0 else bt     # exact table for a single ragged block
        idx = jnp.arange(pw_rows * LANE)
        pw_in = (pw[_cls(idx)] - 1.0).reshape(pw_rows, LANE)
    elif pw_mode == "stream":
        idx = jnp.arange(E_main)
        pw_in = (pw[_cls(idx)] - 1.0).reshape(R, LANE)

    # ---- TensorCore split: only where two cores share this Pallas grid ----
    if num_cores is None:
        num_cores = _num_tensorcores()
    num_cores = 2 if (int(num_cores) >= 2 and nb >= 2) else 1
    bpc = -(-nb // num_cores)                    # row blocks per core
    mask_rows = num_cores * bpc * bt > R         # ragged last block / core overshoot

    kernel = _make_kernel(has_pw=has_pw, pw_rows=pw_rows, gamma=g, ls2=ls2,
                          ignore=ign, bt=bt, bpc=bpc, n_rows=R, mask_rows=mask_rows)

    def xy_map(c, i):
        # clamp so core-overshoot blocks (fully masked in-kernel) stay in range
        return (jnp.minimum(c * bpc + i, nb - 1), 0)

    in_specs = [pl.BlockSpec((bt, LANE), xy_map),
                pl.BlockSpec((bt, LANE), xy_map)]
    operands = [x_m, y_m]
    if pw_mode == "pattern":
        in_specs.append(pl.BlockSpec((pw_rows, LANE), lambda c, i: (0, 0)))
        operands.append(pw_in)
    elif pw_mode == "stream":
        in_specs.append(pl.BlockSpec((bt, LANE), xy_map))
        operands.append(pw_in)

    partials = pl.pallas_call(
        kernel,
        out_shape=jax.ShapeDtypeStruct((num_cores * 8, LANE), jnp.float32),
        grid_spec=pltpu.PrefetchScalarGridSpec(
            num_scalar_prefetch=0,
            grid=(num_cores, bpc),
            in_specs=in_specs,
            out_specs=pl.BlockSpec((8, LANE), lambda c, i: (c, 0)),
            scratch_shapes=[pltpu.VMEM((1, LANE), jnp.float32)],
        ),
        compiler_params=pltpu.CompilerParams(
            dimension_semantics=("parallel", "arbitrary"),
            vmem_limit_bytes=40 * 1024 * 1024),
    )(*operands)

    total = jnp.sum(partials[::8, 0]) + tail_sum   # one scalar partial per core
    # mean over the batch == total_sum / N in both the 2-D and the sequence case.
    return total / jnp.float32(N)
    # TODO(synk): the PyTorch module raises on negative/NaN/Inf loss; that
    # host-side validation is not reproduced here.


def _ref_binary_focal_loss(outputs, label, *, pos_weight=None, ignore_index=-1,
                           gamma=0.0, label_smoothing=0.0):
    """Pure-JAX reference mirroring the PyTorch module (for verification)."""
    ls2 = 2.0 * label_smoothing
    if outputs.ndim == 3:
        N, K, T = outputs.shape
        x = jnp.transpose(outputs, (0, 2, 1)).reshape(-1, K).astype(jnp.float32)
        y = jnp.transpose(label, (0, 2, 1)).reshape(-1, K).astype(jnp.float32)
        sequence = True
    else:
        N, K = outputs.shape
        x = outputs.astype(jnp.float32)
        y = label.astype(jnp.float32)
        sequence = False
    mask = 1.0 - (y == ignore_index).astype(jnp.float32)
    prob = jnp.clip(jax.nn.sigmoid(x), EPS, 1.0 - EPS)
    weight = (1.0 - prob) ** gamma * y * mask + prob ** gamma * (1.0 - y) * mask
    y_s = y * (1.0 - ls2) + 0.5 * ls2
    pw = (jnp.ones((K,), jnp.float32) if pos_weight is None
          else jnp.asarray(pos_weight, jnp.float32))
    bce = pw * y_s * jax.nn.softplus(-x) + (1.0 - y_s) * jax.nn.softplus(x)
    loss = (bce * weight).sum(axis=1)
    if sequence:
        loss = loss.reshape(N, T).sum(axis=1)
    return loss.mean()


if __name__ == "__main__":
    key = jax.random.PRNGKey(0)
    keys = jax.random.split(key, 16)
    ignore_index = -1

    K = 4
    pw4 = 1.0 + 0.1 * jnp.arange(K, dtype=jnp.float32)
    pw5 = 0.5 + 0.25 * jnp.arange(5, dtype=jnp.float32)

    cases = []

    # 1) sequence (2,4,16): E=128 -> one zero-copy row; pos_weight, gamma, smoothing, ignores.
    out = jax.random.normal(keys[0], (2, 4, 16), jnp.float32)
    lab = jax.random.bernoulli(keys[1], 0.5, (2, 4, 16)).astype(jnp.float32)
    lab = jnp.where(jax.random.bernoulli(keys[2], 0.15, (2, 4, 16)),
                    float(ignore_index), lab)
    cases.append(dict(outputs=out, label=lab, pos_weight=pw4, gamma=2.0,
                      label_smoothing=0.05))

    # 2) tiny 2-D (4,4): sub-128 elements -> pure-JAX fallback, plain BCE.
    out = jax.random.normal(keys[3], (4, K), jnp.float32)
    lab = (out > 0).astype(jnp.float32)
    cases.append(dict(outputs=out, label=lab, pos_weight=None, gamma=0.0,
                      label_smoothing=0.0))

    # 3) 2-D (600,4), integer labels (bf16 stream), non-integer gamma, tiny row_tile:
    #    multi-block pipeline + ragged last block + 96-element flat tail in JAX.
    out = jax.random.normal(keys[4], (600, K), jnp.float32)
    lab = jax.random.bernoulli(keys[5], 0.5, (600, K)).astype(jnp.int32)
    cases.append(dict(outputs=out, label=lab, pos_weight=pw4, gamma=1.5,
                      label_smoothing=0.0, row_tile=8))

    # 4) 2-D (256,5): odd class count, zero-copy flat view, exact per-row pw table.
    out = jax.random.normal(keys[6], (256, 5), jnp.float32)
    lab = jax.random.bernoulli(keys[7], 0.5, (256, 5)).astype(jnp.float32)
    lab = jnp.where(jax.random.bernoulli(keys[8], 0.2, (256, 5)),
                    float(ignore_index), lab)
    cases.append(dict(outputs=out, label=lab, pos_weight=pw5, gamma=2.0,
                      label_smoothing=0.1))

    # 5) sequence (64,5,32): periodic 40-row pw pattern tiled in-kernel over 80 rows.
    out = jax.random.normal(keys[9], (64, 5, 32), jnp.float32)
    lab = jax.random.bernoulli(keys[10], 0.5, (64, 5, 32)).astype(jnp.float32)
    cases.append(dict(outputs=out, label=lab, pos_weight=pw5, gamma=2.0,
                      label_smoothing=0.0))

    # 6) sequence (2,5,1025): pathological K*T period -> per-element pw stream
    #    fallback (still no transpose), plus a 10-element ragged tail.
    out = jax.random.normal(keys[11], (2, 5, 1025), jnp.float32)
    lab = jax.random.bernoulli(keys[12], 0.5, (2, 5, 1025)).astype(jnp.float32)
    lab = jnp.where(jax.random.bernoulli(keys[13], 0.1, (2, 5, 1025)),
                    float(ignore_index), lab)
    cases.append(dict(outputs=out, label=lab, pos_weight=pw5, gamma=2.0,
                      label_smoothing=0.05))

    # 7) 2-D (1200,5), row_tile forced to one pattern period: multi-block
    #    accumulation + (on 2-TC chips) the core split + ragged block + tail.
    out = jax.random.normal(keys[14], (1200, 5), jnp.float32)
    lab = jax.random.bernoulli(keys[15], 0.5, (1200, 5)).astype(jnp.float32)
    cases.append(dict(outputs=out, label=lab, pos_weight=pw5, gamma=2.0,
                      label_smoothing=0.0, row_tile=40))

    for cfg in cases:
        kw = dict(cfg)
        outputs = kw.pop("outputs")
        lab = kw.pop("label")
        ref_kw = {k: v for k, v in kw.items() if k != "row_tile"}
        got = jax.block_until_ready(
            binary_focal_loss(outputs, lab, ignore_index=ignore_index, **kw))
        want = _ref_binary_focal_loss(outputs, lab, ignore_index=ignore_index, **ref_kw)
        assert jnp.allclose(got, want, rtol=1e-4, atol=1e-5), (got, want, ref_kw)

    print("KERNEL_OK")
</pallas_src>

<mosaic_0001>
module attributes {stable_mosaic.version = 11 : i64} {
  func.func @kernel(%arg0: i32, %arg1: i32, %arg2: memref<1x128xf32, #tpu.memory_space<vmem>>, %arg3: memref<1x128xf32, #tpu.memory_space<vmem>>, %arg4: memref<1x128xf32, #tpu.memory_space<vmem>>, %arg5: memref<8x128xf32, #tpu.memory_space<vmem>>, %arg6: memref<1x128xf32, #tpu.memory_space<vmem>>) attributes {dimension_semantics = [#tpu.dimension_semantics<parallel>, #tpu.dimension_semantics<arbitrary>], iteration_bounds = array<i64: 1, 1>, scalar_prefetch = 0 : i64, scratch_operands = 1 : i64, tpu.core_type = #tpu.core_type<tc>, window_params = [{transform_indices = @transform_0, window_bounds = array<i64: 1, 128>}, {transform_indices = @transform_1, window_bounds = array<i64: 1, 128>}, {pipeline_mode = #tpu.pipeline_mode<synchronous>, transform_indices = @transform_2, window_bounds = array<i64: 1, 128>}, {transform_indices = @transform_3, window_bounds = array<i64: 8, 128>}]} {
    %c0_i32 = arith.constant 0 : i32
    %0 = arith.cmpi eq, %arg1, %c0_i32 : i32
    %1 = arith.extui %0 : i1 to i32
    %c0_i32_0 = arith.constant 0 : i32
    %2 = arith.cmpi ne, %1, %c0_i32_0 : i32
    scf.if %2 {
      %cst_23 = arith.constant 0.000000e+00 : f32
      %52 = vector.broadcast %cst_23 : f32 to vector<1x128xf32>
      %c0_24 = arith.constant 0 : index
      %c0_25 = arith.constant 0 : index
      %53 = vector.load %arg6[%c0_24, %c0_25] : memref<1x128xf32, #tpu.memory_space<vmem>>, vector<1x128xf32>
      tpu.vector_store %arg6[%c0_24, %c0_25], %52 {strides = array<i32>} : memref<1x128xf32, #tpu.memory_space<vmem>>, vector<1x128xf32>,
    } else {
    }
    %c0 = arith.constant 0 : index
    %c0_1 = arith.constant 0 : index
    %3 = vector.load %arg2[%c0, %c0_1] : memref<1x128xf32, #tpu.memory_space<vmem>>, vector<1x128xf32>
    %c0_2 = arith.constant 0 : index
    %c0_3 = arith.constant 0 : index
    %4 = vector.load %arg3[%c0_2, %c0_3] : memref<1x128xf32, #tpu.memory_space<vmem>>, vector<1x128xf32>
    %cst = arith.constant 0.000000e+00 : f32
    %5 = vector.broadcast %cst : f32 to vector<1x128xf32>
    %6 = arith.subf %5, %3 : vector<1x128xf32>
    %cst_4 = arith.constant 0.000000e+00 : f32
    %7 = vector.broadcast %cst_4 : f32 to vector<1x128xf32>
    %8 = arith.maximumf %6, %7 : vector<1x128xf32>
    %9 = math.absf %3 : vector<1x128xf32>
    %cst_5 = arith.constant 0.000000e+00 : f32
    %10 = vector.broadcast %cst_5 : f32 to vector<1x128xf32>
    %11 = arith.subf %10, %9 : vector<1x128xf32>
    %12 = math.exp %11 : vector<1x128xf32>
    %13 = math.log1p %12 : vector<1x128xf32>
    %14 = arith.addf %8, %13 : vector<1x128xf32>
    %15 = arith.addf %14, %3 : vector<1x128xf32>
    %cst_6 = arith.constant 0.000000e+00 : f32
    %16 = vector.broadcast %cst_6 : f32 to vector<1x128xf32>
    %17 = arith.subf %16, %14 : vector<1x128xf32>
    %18 = math.exp %17 : vector<1x128xf32>
    %cst_7 = arith.constant 1.000000e-07 : f32
    %cst_8 = arith.constant 0.99999988 : f32
    %19 = vector.broadcast %cst_7 : f32 to vector<1x128xf32>
    %20 = arith.maximumf %19, %18 : vector<1x128xf32>
    %21 = vector.broadcast %cst_8 : f32 to vector<1x128xf32>
    %22 = arith.minimumf %21, %20 : vector<1x128xf32>
    %cst_9 = arith.constant 1.000000e+00 : f32
    %23 = vector.broadcast %cst_9 : f32 to vector<1x128xf32>
    %24 = arith.subf %23, %22 : vector<1x128xf32>
    %25 = arith.mulf %22, %22 : vector<1x128xf32>
    %26 = arith.mulf %24, %24 : vector<1x128xf32>
    %27 = arith.subf %26, %25 : vector<1x128xf32>
    %28 = arith.mulf %27, %4 : vector<1x128xf32>
    %29 = arith.addf %25, %28 : vector<1x128xf32>
    %cst_10 = arith.constant 0.899999976 : f32
    %30 = vector.broadcast %cst_10 : f32 to vector<1x128xf32>
    %31 = arith.mulf %4, %30 : vector<1x128xf32>
    %cst_11 = arith.constant 5.000000e-02 : f32
    %32 = vector.broadcast %cst_11 : f32 to vector<1x128xf32>
    %33 = arith.addf %31, %32 : vector<1x128xf32>
    %c0_12 = arith.constant 0 : index
    %c0_13 = arith.constant 0 : index
    %34 = vector.load %arg4[%c0_12, %c0_13] : memref<1x128xf32, #tpu.memory_space<vmem>>, vector<1x128xf32>
    %35 = arith.mulf %34, %14 : vector<1x128xf32>
    %36 = arith.subf %35, %3 : vector<1x128xf32>
    %37 = arith.mulf %33, %36 : vector<1x128xf32>
    %38 = arith.addf %15, %37 : vector<1x128xf32>
    %39 = arith.mulf %38, %29 : vector<1x128xf32>
    %cst_14 = arith.constant -1.000000e+00 : f32
    %40 = vector.broadcast %cst_14 : f32 to vector<1x128xf32>
    %41 = arith.cmpf one, %4, %40 : vector<1x128xf32>
    %cst_15 = arith.constant 0.000000e+00 : f32
    %42 = vector.broadcast %cst_15 : f32 to vector<1x128xf32>
    %43 = arith.select %41, %39, %42 : vector<1x128xi1>, vector<1x128xf32>
    %c0_16 = arith.constant 0 : index
    %c0_17 = arith.constant 0 : index
    %44 = vector.load %arg6[%c0_16, %c0_17] : memref<1x128xf32, #tpu.memory_space<vmem>>, vector<1x128xf32>
    %cst_18 = arith.constant dense<0.000000e+00> : vector<128xf32>
    %45 = vector.multi_reduction <add>, %43, %cst_18 [0] : vector<1x128xf32> to vector<128xf32>
    %46 = vector.shape_cast %45 : vector<128xf32> to vector<1x128xf32>
    %47 = arith.addf %44, %46 : vector<1x128xf32>
    %c0_19 = arith.constant 0 : index
    %c0_20 = arith.constant 0 : index
    %48 = vector.load %arg6[%c0_19, %c0_20] : memref<1x128xf32, #tpu.memory_space<vmem>>, vector<1x128xf32>
    tpu.vector_store %arg6[%c0_19, %c0_20], %47 {strides = array<i32>} : memref<1x128xf32, #tpu.memory_space<vmem>>, vector<1x128xf32>,
    %c0_i32_21 = arith.constant 0 : i32
    %49 = arith.cmpi eq, %arg1, %c0_i32_21 : i32
    %50 = arith.extui %49 : i1 to i32
    %c0_i32_22 = arith.constant 0 : i32
    %51 = arith.cmpi ne, %50, %c0_i32_22 : i32
    scf.if %51 {
      %c0_23 = arith.constant 0 : index
      %c0_24 = arith.constant 0 : index
      %52 = vector.load %arg6[%c0_23, %c0_24] : memref<1x128xf32, #tpu.memory_space<vmem>>, vector<1x128xf32>
      %53 = vector.shape_cast %52 : vector<1x128xf32> to vector<1x1x128xf32>
      %cst_25 = arith.constant dense<0.000000e+00> : vector<1xf32>
      %54 = vector.multi_reduction <add>, %53, %cst_25 [1, 2] : vector<1x1x128xf32> to vector<1xf32>
      %55 = vector.shape_cast %54 : vector<1xf32> to vector<1x1x1xf32>
      %56 = vector.extract %55[0, 0, 0] : f32 from vector<1x1x1xf32>
      %57 = vector.broadcast %56 : f32 to vector<8x128xf32>
      %c0_26 = arith.constant 0 : index
      %c0_27 = arith.constant 0 : index
      %58 = vector.load %arg5[%c0_26, %c0_27] : memref<8x128xf32, #tpu.memory_space<vmem>>, vector<8x128xf32>
      tpu.vector_store %arg5[%c0_26, %c0_27], %57 {strides = array<i32>} : memref<8x128xf32, #tpu.memory_space<vmem>>, vector<8x128xf32>,
    } else {
    }
    return
  }
  func.func @transform_0(%arg0: i32, %arg1: i32) -> (i32, i32) {
    %c1_i32 = arith.constant 1 : i32
    %0 = arith.muli %arg0, %c1_i32 : i32
    %1 = arith.addi %0, %arg1 : i32
    %c0_i32 = arith.constant 0 : i32
    %2 = arith.minsi %1, %c0_i32 : i32
    %c0_i32_0 = arith.constant 0 : i32
    %c0_i32_1 = arith.constant 0 : i32
    return %2, %c0_i32_0 : i32, i32
  }
  func.func @transform_1(%arg0: i32, %arg1: i32) -> (i32, i32) {
    %c1_i32 = arith.constant 1 : i32
    %0 = arith.muli %arg0, %c1_i32 : i32
    %1 = arith.addi %0, %arg1 : i32
    %c0_i32 = arith.constant 0 : i32
    %2 = arith.minsi %1, %c0_i32 : i32
    %c0_i32_0 = arith.constant 0 : i32
    %c0_i32_1 = arith.constant 0 : i32
    return %2, %c0_i32_0 : i32, i32
  }
  func.func @transform_2(%arg0: i32, %arg1: i32) -> (i32, i32) {
    %c0_i32 = arith.constant 0 : i32
    %c0_i32_0 = arith.constant 0 : i32
    %c0_i32_1 = arith.constant 0 : i32
    return %c0_i32, %c0_i32_0 : i32, i32
  }
  func.func @transform_3(%arg0: i32, %arg1: i32) -> (i32, i32) {
    %c0_i32 = arith.constant 0 : i32
    %c0_i32_0 = arith.constant 0 : i32
    return %arg0, %c0_i32 : i32, i32
  }
}

</mosaic_0001>

<bundles_post_ra>
// kernel: tpu_custom_call.1
= control target key start
LH: loop header
LB: loop body
LE: loop exit
PB: predicated region body
PF: predicated region fallthrough
CT: control target
= control target key end

     0   :  { %8 = vsyncpa [#allocation4], 0  ;;  %s257_s0 = inlined_call_operand.hbm [shape: f32[1,128], index: 0, kind: input, shape index: {}]   ;;  %s258_s1 = inlined_call_operand.vmem [shape: f32[1,128], index: 1, kind: input, shape index: {}]   ;;  %s259_s2 = inlined_call_operand.vmem [shape: f32[1,128], index: 2, kind: input, shape index: {}]   ;;  %s260_s3 = inlined_call_operand.hbm [shape: f32[8,128], index: 3, kind: output, shape index: {}]  }
   0x1   :  { %9 = vsyncpa [#allocation5], 0  ;;  %s204_s12 = smov [#allocation3]   ;;  %s156_s16 = scalar_lea.hbm %s257_s0, 16 }
   0x2   :  { %s21_s13 = sshll.u32 %s204_s12, 4  ;;  %p157_p0 = scmp.ne.s32.totalorder %s257_s0, %s156_s16  ;;  %s22_s13 = int_to_ptr.vmem [resolvable:$true] %s21_s13 }
   0x3   :  { %p160_p1 = scmp.lt.u32.totalorder %s156_s16, %s257_s0 }
   0x5   :  { %p162_p2 = pnand %p160_p1, %p157_p0 }
   0x7   :  { %165 = shalt.err (!%p162_p2)
}
   0x8   :  { %s166_s21 = scalar_lea.vmem %s22_s13, 16  ;;  %s170_s22 = scalar_lea.vmem %s22_s13, 32 }
   0x9   :  { %p167_p3 = scmp.ne.s32.totalorder %s22_s13, %s166_s21  ;;  %p171_p4 = scmp.lt.s32.totalorder %s22_s13, %s22_s13 }
   0xa   :  { %p172_p5 = scmp.lt.s32.totalorder %s170_s22, %s166_s21 }
   0xc   :  { %p173_p6 = por %p172_p5, %p171_p4 }
   0xe   :  { %p174_p7 = pnand %p173_p6, %p167_p3 }
  0x10   :  { %177 = shalt.err (!%p174_p7)
}
  0x11   :  { %24 = dma.hbm_to_vmem [thread:$0]  %s257_s0, 16, %s22_s13, [#allocation4]  }
  0x12   :  { %200 = dma.done.wait [#allocation4], 16  }
  0x13   :  { %201 = vsyncadd [#allocation4], 4294967280  ;;  %v205_v0 = vmov 0.0   ;;  %v64_v1 = vld [vmem:[#allocation3] sm:$0x1]  ;;  %vm112_vm2 = vcmask 1040384  }
  0x14   :  { %63 = vst [vmem:[#allocation2] sm:$0x1] %v205_v0  ;;  %v68_v2 = vand.u32 2147483647, %v64_v1  ;;  %v66_v9 = vsub.f32 0.0, %v64_v1 }
  0x15   :  { %v65_v19 = vld [vmem:[%s258_s1] sm:$0x1]  ;;  %s206_s1 = smov [#allocation6]  }
  0x16   :  { %v69_v3 = vsub.f32 0.0, %v68_v2  ;;  %v67_v13 = vmax.f32 %v66_v9, 0.0  ;;  %v96_v20 = vld [vmem:[%s259_s2] sm:$0x1]  ;;  %v94_v21 = vmul.f32 0.9, %v65_v19 }
  0x17   :  { %vm102_vm1 = vcmp.ne.f32.partialorder %v65_v19, -1.0  ;;  %s131_s2 = sshll.u32 %s206_s1, 4  ;;  %s132_s2 = int_to_ptr.vmem [resolvable:$true] %s131_s2 }
  0x18   :  { %v70_v4 = vmul.f32 1.442695, %v69_v3  ;;  %v95_v26 = vadd.f32 0.05, %v94_v21  ;;  %s178_s29 = scalar_lea.vmem %s132_s2, 128  ;;  %p183_p9 = scmp.lt.s32.totalorder %s132_s2, %s132_s2 }
  0x19   :  { %p179_p8 = scmp.ne.s32.totalorder %s132_s2, %s178_s29  ;;  %p184_p10 = scmp.lt.s32.totalorder %s178_s29, %s178_s29 }
  0x1a   :  { %150 = vpow2.f32 %v70_v4 }
  0x1b   :  { %v104_v38 = vld [vmem:[#allocation2] sm:$0x1]  ;;  %p185_p11 = por %p184_p10, %p183_p9 }
  0x1d   :  { %p186_p12 = pnand %p185_p11, %p179_p8 }
  0x24   :  { %v151_v5 = vpop.eup %150 }
  0x25   :  { %v72_v6 = vadd.f32 1.0, %v151_v5  ;;  %v75_v7 = vmul.f32 -0.5, %v151_v5  ;;  %v78_v10 = vand.u32 2147483647, %v151_v5 }
  0x27   :  { %152 = vlog2.f32 %v72_v6  ;;  %v76_v8 = vadd.f32 1.0, %v75_v7  ;;  %vm79_vm0 = vcmp.lt.f32.partialorder %v78_v10, 0.0004427343 }
  0x29   :  { %v77_v11 = vmul.f32 %v151_v5, %v76_v8 }
  0x31   :  { %v153_v12 = vpop.eup %152 }
  0x32   :  { %v74_v14 = vmul.f32 0.6931472, %v153_v12 }
  0x34   :  { %v80_v15 = vsel %vm79_vm0, %v77_v11, %v74_v14 }
  0x35   :  { %v81_v16 = vadd.f32 %v80_v15, %v67_v13 }
  0x37   :  { %v83_v17 = vsub.f32 0.0, %v81_v16  ;;  %v97_v22 = vmul.f32 %v96_v20, %v81_v16  ;;  %v82_v30 = vadd.f32 %v81_v16, %v64_v1 }
  0x39   :  { %v84_v18 = vmul.f32 1.442695, %v83_v17  ;;  %v98_v27 = vsub.f32 %v97_v22, %v64_v1 }
  0x3b   :  { %154 = vpow2.f32 %v84_v18  ;;  %v99_v32 = vmul.f32 %v98_v27, %v95_v26 }
  0x3d   :  { %v100_v35 = vadd.f32 %v99_v32, %v82_v30 }
  0x45   :  { %v155_v23 = vpop.eup %154 }
  0x46   :  { %v86_v24 = vmax.f32 %v155_v23, 1e-07 }
  0x48   :  { %v87_v25 = vmin.f32 %v86_v24, 0.9999999 }
  0x4a   :  { %v88_v28 = vsub.f32 1.0, %v87_v25  ;;  %v89_v29 = vmul.f32 %v87_v25, %v87_v25 }
  0x4c   :  { %v90_v31 = vmul.f32 %v88_v28, %v88_v28 }
  0x4e   :  { %v91_v33 = vsub.f32 %v90_v31, %v89_v29 }
  0x50   :  { %v92_v34 = vmul.f32 %v91_v33, %v65_v19 }
  0x52   :  { %v93_v36 = vadd.f32 %v92_v34, %v89_v29 }
  0x54   :  { %v101_v37 = vmul.f32 %v100_v35, %v93_v36 }
  0x56   :  { %v103_v39 = vsel %vm102_vm1, %v101_v37, 0.0 }
  0x57   :  { %v106_v40 = vadd.f32 %v104_v38, %v103_v39 }
  0x59   :  { %107 = vst [vmem:[#allocation2] sm:$0x1] %v106_v40 }
  0x60   :  { %v111_v41 = vld [vmem:[#allocation2] sm:$0x1] }
  0x61   :  { %v113_v42 = vsel %vm112_vm2, %v111_v41, 0.0 }
  0x62   :  { %114 = vadd.xlane.f32.xlu0 %v113_v42 }
  0xef   :  { %v115_v43 = vpop.xlane.xlu0 %114 }
  0xf0   :  { %v116_v44 = vrot.slane %v115_v43, 4 }
  0xf2   :  { %v117_v45 = vadd.f32 %v116_v44, %v115_v43 }
  0xf4   :  { %v118_v46 = vrot.slane %v117_v45, 2 }
  0xf6   :  { %v119_v47 = vadd.f32 %v118_v46, %v117_v45 }
  0xf8   :  { %v120_v48 = vrot.slane %v119_v47, 1 }
  0xfa   :  { %v121_v49 = vadd.f32 %v120_v48, %v119_v47 }
  0xfc   :  { %145 = vpush %v121_v49 }
 0x12d   :  { %s146_s28 = spop %145 }
 0x12e   :  { %v123_v50 = vstv %s146_s28 }
 0x12f   :  { %124 = vst [vmem:[#allocation6] sm:$0xff] %v123_v50 }
 0x130   :  { %189 = shalt.err (!%p186_p12)
}
 0x131   :  { %s190_s5 = scalar_lea.hbm %s260_s3, 128 }
 0x132   :  { %p191_p13 = scmp.ne.s32.totalorder %s260_s3, %s190_s5  ;;  %p194_p0 = scmp.lt.u32.totalorder %s190_s5, %s260_s3 }
 0x134   :  { %p196_p1 = pnand %p194_p0, %p191_p13 }
 0x136   :  { %199 = shalt.err (!%p196_p1)
}
 0x137   :  { %134 = dma.vmem_to_hbm [thread:$0]  %s132_s2, 128, %s260_s3, [#allocation5]  }
 0x138   :  { %202 = dma.done.wait [#allocation5], 128  }
 0x139   :  { %203 = vsyncadd [#allocation5], 4294967168 }
 0x13a   :  { %138 = vsyncpa [#allocation4], 1 }
 0x13b   :  { %139 = vsyncpa [#allocation5], 1 }

</bundles_post_ra>
